<compile_context>
chip_gen: v7x
topology: tpu7x:2x2x1
jax: 0.10.0
libtpu: 0.0.40
codegen_flags: <defaults>
</compile_context>

<pallas_src>
import jax
import jax.numpy as jnp
from jax.experimental import pallas as pl
from jax.experimental.pallas import tpu as pltpu

# Hyper-parameters the original script takes from argparse (fixed here).
DATA_SIZE = 64
TIME_HORIZON = 10.0
R = 1.0
V_MAX = 1.0

IDX_SCALE = (DATA_SIZE - 1) / TIME_HORIZON   # fold the divide into one multiply
INV_R = 1.0 / R

# NOTE: index math is done in f32 (can differ by +-1 from PyTorch's float64
# int(t*63/10) exactly at grid boundaries), and the index is clamped to
# [0, DATA_SIZE-1] so stepper overshoot past TIME_HORIZON never reads OOB.
# Both are documented behavioral differences vs. the raw PyTorch module.


# ----------------------------------------------------------------------------
# Single evaluation: exact nn.Module.forward semantics (batch = 1).
# ----------------------------------------------------------------------------
def _lambda_single_kernel(t_ref, alpha_seq_ref, v_seq_ref, y_ref, out_ref):
    # t, alpha_t_seq, v_t_seq live in SMEM (scalar path); y / out in VMEM.
    t = t_ref[0]
    time_index = jnp.clip((t * IDX_SCALE).astype(jnp.int32), 0, DATA_SIZE - 1)
    alpha_t = alpha_seq_ref[time_index]
    v_t = v_seq_ref[time_index]

    y = y_ref[...]                        # (1, 3)
    theta = y[:, 2:3]                     # (1, 1)

    dxdt = v_t * jnp.cos(theta)           # (1, 1)
    dydt = v_t * jnp.sin(theta)           # (1, 1)
    dthetadt = alpha_t * v_t * INV_R      # scalar

    # Assemble [dxdt, dydt, dthetadt] along the state (lane) axis, one store.
    col = jax.lax.broadcasted_iota(jnp.int32, y.shape, 1)   # (1, 3)
    out_ref[...] = jnp.where(col == 0, dxdt,
                             jnp.where(col == 1, dydt, dthetadt))


def lambda_forward(t_arr, y, alpha_t_seq, v_t_seq):
    """Single forward evaluation (module-parity path, batch = 1).

    t_arr: (1,) f32; y: (1, 3) f32; alpha_t_seq / v_t_seq: (DATA_SIZE,) f32.
    """
    return pl.pallas_call(
        _lambda_single_kernel,
        out_shape=jax.ShapeDtypeStruct(y.shape, jnp.float32),
        in_specs=[
            pl.BlockSpec(memory_space=pltpu.MemorySpace.SMEM),   # t
            pl.BlockSpec(memory_space=pltpu.MemorySpace.SMEM),   # alpha_t_seq
            pl.BlockSpec(memory_space=pltpu.MemorySpace.SMEM),   # v_t_seq
            pl.BlockSpec(memory_space=pltpu.MemorySpace.VMEM),   # y
        ],
        out_specs=pl.BlockSpec(memory_space=pltpu.MemorySpace.VMEM),
    )(t_arr, alpha_t_seq, v_t_seq, y)


# ----------------------------------------------------------------------------
# Batched performance path: T (t, y) pairs, gridded over the lane axis.
# Layout: ts (1, T), ys/out (3, T) with rows [x; y; theta] / derivatives.
# Per grid step the kernel sees a TL-lane tile; the alpha/v table gather is
# routed through the MXU as one (2, K) @ (K, TL) one-hot dot.
# ----------------------------------------------------------------------------
def _lambda_batch_kernel(ts_ref, y_ref, av_ref, out_ref):
    ts = ts_ref[...]                                                      # (1, TL)
    tl = ts.shape[1]
    idx = jnp.clip((ts * IDX_SCALE).astype(jnp.int32), 0, DATA_SIZE - 1)  # (1, TL)

    # One-hot mask built once (shared compare), gather on the otherwise-idle MXU:
    # av (2, K) @ onehot (K, TL) -> (2, TL).  Exact: one-hot has a single 1.0.
    k = jax.lax.broadcasted_iota(jnp.int32, (DATA_SIZE, tl), 0)           # (K, TL)
    onehot = (k == idx).astype(jnp.float32)                               # (K, TL)
    avt = jnp.dot(av_ref[...], onehot, preferred_element_type=jnp.float32)  # (2, TL)
    alpha_t = avt[0:1, :]                                                 # (1, TL)
    v_t = avt[1:2, :]                                                     # (1, TL)

    theta = y_ref[2:3, :]                                                 # (1, TL)
    dxdt = v_t * jnp.cos(theta)
    dydt = v_t * jnp.sin(theta)
    dthetadt = alpha_t * v_t * INV_R

    # Single lane-dense full-tile store (TL is a multiple of 128).
    row = jax.lax.broadcasted_iota(jnp.int32, out_ref.shape, 0)           # (3, TL)
    out_ref[...] = jnp.where(row == 0, dxdt,
                             jnp.where(row == 1, dydt, dthetadt))


def lambda_forward_batched(ts, ys, av, *, lane_tile=512):
    """Evaluate the Lambda dynamics at T (t, y) pairs in one gridded kernel.

    ts: (1, T) f32 times; ys: (3, T) f32 states (rows x, y, theta);
    av: (2, DATA_SIZE) f32 with row 0 = alpha_t_seq, row 1 = v_t_seq
    (pre-stacked once at init).  Returns (3, T) f32 [dx/dt; dy/dt; dtheta/dt].
    """
    t_len = ts.shape[1]
    tl = lane_tile if (t_len >= lane_tile and t_len % lane_tile == 0) else t_len
    grid = (t_len // tl,)
    return pl.pallas_call(
        _lambda_batch_kernel,
        out_shape=jax.ShapeDtypeStruct((3, t_len), jnp.float32),
        grid=grid,
        in_specs=[
            pl.BlockSpec((1, tl), lambda g: (0, g)),                # ts tile
            pl.BlockSpec((3, tl), lambda g: (0, g)),                # ys tile
            pl.BlockSpec((2, DATA_SIZE), lambda g: (0, 0)),         # av (whole)
        ],
        out_specs=pl.BlockSpec((3, tl), lambda g: (0, g)),
        compiler_params=pltpu.CompilerParams(
            dimension_semantics=("parallel",)),                     # v7x: 2 TCs
    )(ts, ys, av)


if __name__ == "__main__":
    key = jax.random.PRNGKey(0)
    k1, k2, k3, k4 = jax.random.split(key, 4)

    # "Parameters" of the module, cast/shaped exactly once.
    alpha_t_seq = jax.random.uniform(k1, (DATA_SIZE,), jnp.float32) * 2.0 - 1.0
    v_t_seq = jax.random.uniform(k2, (DATA_SIZE,), jnp.float32) * V_MAX
    av = jnp.stack([alpha_t_seq, v_t_seq], axis=0)          # (2, DATA_SIZE)

    # ---------------- single evaluation (exact module forward) --------------
    y0 = jnp.array([[0.3, -0.2, 0.7]], dtype=jnp.float32)   # [[x, y, theta]]
    t_arr = jnp.full((1,), 3.7, dtype=jnp.float32)

    single = jax.jit(lambda_forward)
    out1 = jax.block_until_ready(single(t_arr, y0, alpha_t_seq, v_t_seq))

    # Reference uses the same f32 index arithmetic as the kernel.
    ti = int(jnp.clip((jnp.float32(3.7) * jnp.float32(IDX_SCALE))
                      .astype(jnp.int32), 0, DATA_SIZE - 1))
    a = alpha_t_seq[ti]
    v = v_t_seq[ti]
    theta0 = y0[:, 2]
    ref1 = jnp.stack(
        [v * jnp.cos(theta0), v * jnp.sin(theta0), jnp.full((1,), a * v / R)],
        axis=1,
    )
    assert out1.shape == (1, 3)
    assert jnp.allclose(out1, ref1, atol=1e-5), (out1, ref1)

    # ---------------- batched, gridded evaluation ----------------------------
    T = 2048                                                 # 4 grid steps of 512 lanes
    ts = jax.random.uniform(k3, (1, T), jnp.float32) * TIME_HORIZON
    ys = jax.random.uniform(k4, (3, T), jnp.float32) * 2.0 - 1.0

    batched = jax.jit(lambda_forward_batched)
    out2 = jax.block_until_ready(batched(ts, ys, av))

    # Pure-JAX reference with the same f32 index arithmetic as the kernel.
    idx = jnp.clip((ts * jnp.float32(IDX_SCALE)).astype(jnp.int32),
                   0, DATA_SIZE - 1)[0]                      # (T,)
    a_b = alpha_t_seq[idx]
    v_b = v_t_seq[idx]
    theta_b = ys[2, :]
    ref2 = jnp.stack(
        [v_b * jnp.cos(theta_b), v_b * jnp.sin(theta_b), a_b * v_b / R],
        axis=0,
    )                                                        # (3, T)
    assert out2.shape == (3, T)
    assert jnp.allclose(out2, ref2, atol=1e-5), (out2, ref2)

    print("KERNEL_OK")
</pallas_src>

<mosaic_0001>
module attributes {stable_mosaic.version = 11 : i64} {
  func.func @_lambda_single_kernel(%arg0: memref<1xf32, #tpu.memory_space<smem>>, %arg1: memref<64xf32, #tpu.memory_space<smem>>, %arg2: memref<64xf32, #tpu.memory_space<smem>>, %arg3: memref<1x3xf32, #tpu.memory_space<vmem>>, %arg4: memref<1x3xf32, #tpu.memory_space<vmem>>) attributes {dimension_semantics = [], scalar_prefetch = 0 : i64, scratch_operands = 0 : i64, tpu.core_type = #tpu.core_type<tc>} {
    %c0 = arith.constant 0 : index
    %0 = memref.load %arg0[%c0] : memref<1xf32, #tpu.memory_space<smem>>
    %cst = arith.constant 6.300000e+00 : f32
    %1 = arith.mulf %0, %cst : f32
    %2 = arith.fptosi %1 : f32 to i32
    %c0_i32 = arith.constant 0 : i32
    %c63_i32 = arith.constant 63 : i32
    %3 = arith.maxsi %c0_i32, %2 : i32
    %4 = arith.minsi %c63_i32, %3 : i32
    %5 = arith.index_cast %4 : i32 to index
    %6 = memref.load %arg1[%5] : memref<64xf32, #tpu.memory_space<smem>>
    %7 = arith.index_cast %4 : i32 to index
    %8 = memref.load %arg2[%7] : memref<64xf32, #tpu.memory_space<smem>>
    %c0_0 = arith.constant 0 : index
    %c0_1 = arith.constant 0 : index
    %9 = vector.load %arg3[%c0_0, %c0_1] : memref<1x3xf32, #tpu.memory_space<vmem>>, vector<1x3xf32>
    %10 = vector.extract_strided_slice %9 {offsets = [0, 2], sizes = [1, 1], strides = [1, 1]} : vector<1x3xf32> to vector<1x1xf32>
    %11 = math.cos %10 : vector<1x1xf32>
    %12 = vector.broadcast %8 : f32 to vector<1x1xf32>
    %13 = arith.mulf %12, %11 : vector<1x1xf32>
    %14 = math.sin %10 : vector<1x1xf32>
    %15 = vector.broadcast %8 : f32 to vector<1x1xf32>
    %16 = arith.mulf %15, %14 : vector<1x1xf32>
    %17 = arith.mulf %6, %8 : f32
    %cst_2 = arith.constant 1.000000e+00 : f32
    %18 = arith.mulf %17, %cst_2 : f32
    %19 = tpu.iota {dimensions = array<i32: 1>} : vector<1x3xi32>
    %c0_i32_3 = arith.constant 0 : i32
    %20 = vector.broadcast %c0_i32_3 : i32 to vector<1x3xi32>
    %21 = arith.cmpi eq, %19, %20 : vector<1x3xi32>
    %c1_i32 = arith.constant 1 : i32
    %22 = vector.broadcast %c1_i32 : i32 to vector<1x3xi32>
    %23 = arith.cmpi eq, %19, %22 : vector<1x3xi32>
    %24 = vector.shape_cast %16 : vector<1x1xf32> to vector<1x1xf32>
    %25 = vector.broadcast %24 : vector<1x1xf32> to vector<1x3xf32>
    %26 = vector.broadcast %18 : f32 to vector<1x3xf32>
    %27 = arith.select %23, %25, %26 : vector<1x3xi1>, vector<1x3xf32>
    %28 = vector.shape_cast %13 : vector<1x1xf32> to vector<1x1xf32>
    %29 = vector.broadcast %28 : vector<1x1xf32> to vector<1x3xf32>
    %30 = arith.select %21, %29, %27 : vector<1x3xi1>, vector<1x3xf32>
    %c0_4 = arith.constant 0 : index
    %c0_5 = arith.constant 0 : index
    %31 = vector.load %arg4[%c0_4, %c0_5] : memref<1x3xf32, #tpu.memory_space<vmem>>, vector<1x3xf32>
    tpu.vector_store %arg4[%c0_4, %c0_5], %30 {strides = array<i32>} : memref<1x3xf32, #tpu.memory_space<vmem>>, vector<1x3xf32>,
    return
  }
}

</mosaic_0001>

<bundles_post_ra>
// kernel: lambda_forward.1
= control target key start
LH: loop header
LB: loop body
LE: loop exit
PB: predicated region body
PF: predicated region fallthrough
CT: control target
= control target key end

     0   :  { %10 = vsyncpa [#allocation5], 0  ;;  %s483_s0 = inlined_call_operand.<no memory space> [shape: f32[1], index: 0, kind: input, shape index: {}]   ;;  %s484_s1 = inlined_call_operand.vmem [shape: f32[64], index: 1, kind: input, shape index: {}]   ;;  %s485_s2 = inlined_call_operand.vmem [shape: f32[64], index: 2, kind: input, shape index: {}]   ;;  %s486_s3 = inlined_call_operand.vmem [shape: f32[1,3], index: 3, kind: input, shape index: {}]   ;;  %s487_s4 = inlined_call_operand.hbm [shape: f32[1,3], index: 4, kind: output, shape index: {}]  }
   0x1   :  { %11 = vsyncpa [#allocation7], 0 }
   0x2   :  { %12 = vsyncpa [#allocation4], 0  ;;  %s21_s17 = sshll.u32 %s484_s1, 4  ;;  %s31_s20 = sshll.u32 %s485_s2, 4  ;;  %s22_s17 = int_to_ptr.vmem [resolvable:$true] %s21_s17  ;;  %s32_s20 = int_to_ptr.vmem [resolvable:$true] %s31_s20 }
   0x3   :  { %s347_s21 = scalar_lea.vmem %s22_s17, 16  ;;  %p352_p1 = scmp.lt.s32.totalorder %s22_s17, %s22_s17 }
   0x4   :  { %p348_p0 = scmp.ne.s32.totalorder %s22_s17, %s347_s21  ;;  %p353_p2 = scmp.lt.s32.totalorder %s347_s21, %s347_s21 }
   0x6   :  { %p354_p3 = por %p353_p2, %p352_p1 }
   0x8   :  { %p355_p4 = pnand %p354_p3, %p348_p0 }
   0xa   :  { %358 = shalt.err (!%p355_p4)
}
   0xb   :  { %s399_s22 = smov [#allocation3]   ;;  %s359_s23 = scalar_lea.vmem %s32_s20, 16 }
   0xc   :  { %24 = dma.vmem_to_smem %s22_s17, 16, %s399_s22, [#allocation5]  }
   0xd   :  { %p360_p5 = scmp.ne.s32.totalorder %s32_s20, %s359_s23  ;;  %p364_p6 = scmp.lt.s32.totalorder %s32_s20, %s32_s20 }
   0xe   :  { %p365_p7 = scmp.lt.s32.totalorder %s359_s23, %s359_s23 }
  0x10   :  { %p366_p8 = por %p365_p7, %p364_p6 }
  0x12   :  { %p367_p9 = pnand %p366_p8, %p360_p5 }
  0x14   :  { %370 = shalt.err (!%p367_p9)
}
  0x15   :  { %s400_s1 = smov [#allocation6]  }
  0x16   :  { %34 = dma.vmem_to_smem %s32_s20, 16, %s400_s1, [#allocation7]  }
  0x17   :  { %393 = dma.done.wait [#allocation5], 16  }
  0x18   :  { %394 = vsyncadd [#allocation5], 4294967280 }
  0x19   :  { %395 = dma.done.wait [#allocation7], 16  }
  0x1a   :  { %396 = vsyncadd [#allocation7], 4294967280 }
  0x1b   :  { %43 = sfence }
  0x1c   :  { %v443_v0 = vld [vmem:[%s486_s3] sm:$0x1]  ;;  %v401_v1 = vmov 2   ;;  %v402_v13 = vmov 683565275   ;;  %s408_s6 = smov [#allocation8]  }
  0x1d   :  { %342 = vset.pattern.permute.xlu0 %v401_v1  ;;  %v57_v2 = vand.u32 2139095040, %v443_v0  ;;  %v54_v4 = vand.u32 2147483647, %v443_v0  ;;  %v403_v15 = vmov 2475754826   ;;  %vm56_vm7 = vcmp.lt.s32.totalorder %v443_v0, 0 }
  0x1e   :  { %v404_v17 = vmov 2131351028   ;;  %v405_v19 = vmov 2102212464   ;;  %v406_v21 = vmov 920167782   ;;  %vm146_vm15 = vweird.f32 %v443_v0 }
  0x1f   :  { %v58_v3 = vshrl.u32 %v57_v2, 23  ;;  %v61_v7 = vand.u32 8388607, %v54_v4  ;;  %v407_v28 = vmov 1326507024   ;;  %s298_s7 = sshll.u32 %s408_s6, 4  ;;  %s299_s7 = int_to_ptr.vmem [resolvable:$true] %s298_s7 }
  0x20   :  { %s45_s26 = smul.f32 6.3, %s483_s0  ;;  %vm55_vm8 = vcmp.le.f32.partialorder %v54_v4, 0.7853982  ;;  %s371_s8 = scalar_lea.vmem %s299_s7, 16 }
  0x21   :  { %v313_v5 = vadd.s32 4294967169, %v58_v3  ;;  %v62_v10 = vor.u32 8388608, %v61_v7  ;;  %p372_p13 = scmp.ne.s32.totalorder %s299_s7, %s371_s8  ;;  %s375_s9 = scalar_lea.vmem %s299_s7, 32 }
  0x22   :  { %p323_p10 = scmp.lt.s32.totalorder %s45_s26, 0  ;;  %s324_s27 = sceil.f32 %s45_s26 }
  0x23   :  { %v64_v6 = vadd.s32 1, %v313_v5  ;;  %v102_v30 = vshll.u32 %v62_v10, 8  ;;  %s325_s28 = sfloor.f32 %s45_s26  ;;  %p376_p0 = scmp.lt.s32.totalorder %s299_s7, %s299_s7 }
  0x24   :  { %s489_s27 = smov (!%p323_p10, %s324_s27), %s325_s28  ;;  %p377_p1 = scmp.lt.s32.totalorder %s375_s9, %s371_s8 }
  0x25   :  { %vm65_vm0 = vcmp.gt.s32.totalorder %v64_v6, 0  ;;  %s327_s29 = scvt.f32.s32 %s489_s27 }
  0x26   :  { %v66_v8 = vsel %vm65_vm0, %v64_v6, 0  ;;  %p378_p2 = por %p377_p1, %p376_p0 }
  0x27   :  { %v68_v9 = vand.u32 31, %v66_v8  ;;  %v67_v11 = vshrl.u32 %v66_v8, 5  ;;  %p47_p11 = scmp.gt.s32.totalorder %s327_s29, 0  ;;  %p308_p12 = scmp.lt.s32.totalorder %s327_s29, 63 }
  0x28   :  { %p379_p3 = pnand %p378_p2, %p372_p13 }
  0x29   :  { %v69_v12 = vsub.s32 32, %v68_v9  ;;  %v71_v14 = vshll.u32 %v402_v13, %v68_v9  ;;  %v74_v16 = vshll.u32 %v403_v15, %v68_v9  ;;  %v77_v18 = vshll.u32 %v404_v17, %v68_v9  ;;  %s491_s29 = smov (!%p47_p11, %s327_s29), 0 }
  0x2a   :  { %v80_v20 = vshll.u32 %v405_v19, %v68_v9  ;;  %v83_v22 = vshll.u32 %v406_v21, %v68_v9  ;;  %vm86_vm1 = vcmp.lt.s32.totalorder %v67_v11, 1  ;;  %vm89_vm2 = vcmp.lt.s32.totalorder %v67_v11, 4  ;;  %s493_s29 = smov (!%p308_p12, %s491_s29), 63 }
  0x2b   :  { %v70_v23 = vshrl.u32 %v402_v13, %v69_v12  ;;  %v72_v24 = vshrl.u32 %v403_v15, %v69_v12  ;;  %v75_v25 = vshrl.u32 %v404_v17, %v69_v12  ;;  %v78_v26 = vshrl.u32 %v405_v19, %v69_v12  ;;  %s466_s0 = sld [smem:[#allocation6 + %s493_s29]] }
  0x2c   :  { %v81_v27 = vshrl.u32 %v406_v21, %v69_v12  ;;  %v84_v29 = vshrl.u32 %v407_v28, %v69_v12  ;;  %vm87_vm3 = vcmp.lt.s32.totalorder %v67_v11, 2  ;;  %vm88_vm4 = vcmp.lt.s32.totalorder %v67_v11, 3  ;;  %s51_s30 = sld [smem:[#allocation3 + %s493_s29]] }
  0x2d   :  { %v73_v31 = vor.u32 %v72_v24, %v71_v14  ;;  %v76_v32 = vor.u32 %v75_v25, %v74_v16  ;;  %v79_v33 = vor.u32 %v78_v26, %v77_v18 }
  0x2e   :  { %v82_v34 = vor.u32 %v81_v27, %v80_v20  ;;  %v85_v35 = vor.u32 %v84_v29, %v83_v22 }
  0x2f   :  { %v90_v36 = vsel %vm86_vm1, %v70_v23, %v73_v31  ;;  %v91_v37 = vsel %vm89_vm2, %v79_v33, 2102212464  ;;  %v94_v38 = vsel %vm86_vm1, %v73_v31, %v76_v32  ;;  %v98_v39 = vsel %vm86_vm1, %v76_v32, %v79_v33 }
  0x30   :  { %v92_v40 = vsel %vm88_vm4, %v76_v32, %v91_v37  ;;  %v95_v41 = vsel %vm89_vm2, %v82_v34, 920167782  ;;  %v99_v42 = vsel %vm89_vm2, %v85_v35, 1326507024  ;;  %vm290_vm2 = vcmask 16384  }
  0x31   :  { %v96_v43 = vsel %vm88_vm4, %v79_v33, %v95_v41  ;;  %v100_v44 = vsel %vm88_vm4, %v82_v34, %v99_v42  ;;  %v93_v45 = vsel %vm87_vm3, %v90_v36, %v92_v40 }
  0x32   :  { %v97_v46 = vsel %vm87_vm3, %v94_v38, %v96_v43  ;;  %v101_v47 = vsel %vm87_vm3, %v98_v39, %v100_v44  ;;  %v109_v52 = vmul.u32 %v102_v30, %v93_v45  ;;  %s264_s5 = smul.f32 %s466_s0, %s51_s30  ;;  %v265_v38 = vlaneseq }
  0x33   :  { %v449_v48 = vmul.u32.u64.low %v102_v30, %v101_v47  ;;  %v450_v49 = vmul.u32.u64.high %v102_v30, %v101_v47, %v449_v48  ;;  %v452_v50 = vmul.u32.u64.low %v102_v30, %v97_v46  ;;  %v453_v51 = vmul.u32.u64.high %v102_v30, %v97_v46, %v452_v50 }
  0x34   :  { %v157_v30 = vstv %s466_s0  ;;  %v275_v39 = vshrl.u32 %v265_v38, 7  ;;  %v266_v41 = vand.u32 127, %v265_v38  ;;  %v278_v43 = vstv %s264_s5 }
  0x35   :  { %vm111_vm5 = vc.u32 %v450_v49, %v452_v50  ;;  %v112_v53 = vadd.s32 1, %v453_v51  ;;  %v110_v1 = vadd.s32 %v452_v50, %v450_v49 }
  0x36   :  { %v276_v40 = vsub.s32 0, %v275_v39  ;;  %vm268_vm0 = vcmp.eq.s32.totalorder %v266_v41, 1  ;;  %vm267_vm1 = vcmp.eq.s32.totalorder %v266_v41, 0 }
  0x37   :  { %v113_v54 = vsel %vm111_vm5, %v112_v53, %v453_v51 }
  0x38   :  { %v114_v55 = vadd.s32 %v113_v54, %v109_v52 }
  0x3a   :  { %v115_v56 = vadd.s32 536870912, %v114_v55 }
  0x3c   :  { %v116_v57 = vshrl.u32 %v115_v56, 30 }
  0x3e   :  { %v117_v58 = vshll.u32 %v116_v57, 30  ;;  %v140_v14 = vsub.s32 4, %v116_v57 }
  0x40   :  { %v118_v59 = vsub.s32 %v114_v55, %v117_v58  ;;  %v141_v17 = vsel %vm56_vm7, %v140_v14, %v116_v57 }
  0x41   :  { %v143_v20 = vsel %vm55_vm8, 0, %v141_v17 }
  0x42   :  { %v120_v60 = vsub.s32 0, %v118_v59  ;;  %v252_v21 = vadd.s32 3, %v143_v20  ;;  %v147_v22 = vand.u32 3, %v143_v20 }
  0x44   :  { %v314_v61 = vmin.u32 %v120_v60, %v118_v59  ;;  %v253_v23 = vand.u32 3, %v252_v21  ;;  %vm152_vm9 = vcmp.eq.s32.totalorder %v147_v22, 2  ;;  %vm149_vm11 = vcmp.eq.s32.totalorder %v147_v22, 0 }
  0x45   :  { %vm148_vm13 = vcmp.lt.s32.totalorder %v147_v22, 2 }
  0x46   :  { %v122_v62 = vclz %v314_v61  ;;  %vm258_vm10 = vcmp.eq.s32.totalorder %v253_v23, 2  ;;  %vm255_vm12 = vcmp.eq.s32.totalorder %v253_v23, 0  ;;  %vm254_vm14 = vcmp.lt.s32.totalorder %v253_v23, 2 }
  0x48   :  { %v315_v63 = vadd.s32 4294967294, %v122_v62 }
  0x4a   :  { %vm316_vm6 = vcmp.lt.s32.totalorder %v315_v63, 0 }
  0x4b   :  { %v125_v2 = vsel %vm316_vm6, 0, %v315_v63 }
  0x4c   :  { %v126_v3 = vsub.s32 32, %v125_v2  ;;  %v127_v5 = vshll.u32 %v118_v59, %v125_v2  ;;  %v130_v6 = vsub.s32 4294967266, %v125_v2 }
  0x4e   :  { %v128_v7 = vshrl.u32 %v110_v1, %v126_v3  ;;  %v131_v8 = vadd.s32 127, %v130_v6 }
  0x50   :  { %v129_v9 = vor.u32 %v128_v7, %v127_v5  ;;  %v132_v10 = vshll.u32 %v131_v8, 23 }
  0x52   :  { %v133_v11 = vor.u32 4788187, %v132_v10  ;;  %v136_v12 = vcvt.s32.f32 %v129_v9 }
  0x54   :  { %v134_v13 = vand.u32 2147483647, %v133_v11 }
  0x56   :  { %v137_v15 = vmul.f32 %v136_v12, %v134_v13 }
  0x58   :  { %v138_v16 = vxor.u32 2147483648, %v137_v15 }
  0x5a   :  { %v139_v18 = vsel %vm56_vm7, %v138_v16, %v137_v15 }
  0x5b   :  { %v142_v19 = vsel %vm55_vm8, %v443_v0, %v139_v18 }
  0x5c   :  { %343 = vcosq.f32 %v142_v19 }
  0x5d   :  { %345 = vsinq.f32 %v142_v19 }
  0x66   :  { %v344_v24 = vpop.eup %343 }
  0x67   :  { %v346_v4 = vpop.eup %345  ;;  %v153_v25 = vxor.u32 2147483648, %v344_v24 }
  0x68   :  { %v150_v26 = vxor.u32 2147483648, %v346_v4 }
  0x69   :  { %v154_v27 = vsel %vm152_vm9, %v153_v25, %v346_v4  ;;  %v260_v28 = vsel %vm258_vm10, %v153_v25, %v346_v4 }
  0x6a   :  { %v151_v29 = vsel %vm149_vm11, %v344_v24, %v150_v26  ;;  %v257_v31 = vsel %vm255_vm12, %v344_v24, %v150_v26 }
  0x6b   :  { %v155_v32 = vsel %vm148_vm13, %v151_v29, %v154_v27  ;;  %v261_v33 = vsel %vm254_vm14, %v257_v31, %v260_v28 }
  0x6c   :  { %v156_v34 = vsel %vm146_vm15, nan, %v155_v32  ;;  %v262_v35 = vsel %vm146_vm15, nan, %v261_v33 }
  0x6d   :  { %v263_v36 = vmul.f32 %v262_v35, %v157_v30  ;;  %v158_v37 = vmul.f32 %v157_v30, %v156_v34 }
  0x6f   :  { %271 = vperm.xlu0 %342, %v263_v36  }
  0x73   :  { %282 = vperm.xlu0 %342, %v158_v37  }
  0xee   :  { %v272_v42 = vpop.permute.xlu0 %271 }
  0xef   :  { %v277_v0 = vrot.slane %v272_v42, %v276_v40 }
  0xf1   :  { %v279_v46 = vsel %vm268_vm0, %v277_v0, %v278_v43 }
  0xf2   :  { %v283_v44 = vpop.permute.xlu0 %282 }
  0xf3   :  { %v288_v45 = vrot.slane %v283_v44, %v276_v40 }
  0xf5   :  { %v289_v47 = vsel %vm267_vm1, %v288_v45, %v279_v46 }
  0xf6   :  { %291 = vst.msk [vmem:[#allocation8] sm:$0x1] %vm290_vm2, %v289_v47 }
  0xf7   :  { %382 = shalt.err (!%p379_p3)
}
  0xf8   :  { %s383_s12 = scalar_lea.hbm %s487_s4, 16 }
  0xf9   :  { %p384_p4 = scmp.ne.s32.totalorder %s487_s4, %s383_s12  ;;  %p387_p5 = scmp.lt.u32.totalorder %s383_s12, %s487_s4 }
  0xfb   :  { %p389_p6 = pnand %p387_p5, %p384_p4 }
  0xfd   :  { %392 = shalt.err (!%p389_p6)
}
  0xfe   :  { %301 = dma.vmem_to_hbm [thread:$0]  %s299_s7, 16, %s487_s4, [#allocation4]  }
  0xff   :  { %397 = dma.done.wait [#allocation4], 16  }
 0x100   :  { %398 = vsyncadd [#allocation4], 4294967280 }
 0x101   :  { %305 = vsyncpa [#allocation4], 1 }
 0x102   :  { %306 = vsyncpa [#allocation5], 1 }
 0x103   :  { %307 = vsyncpa [#allocation7], 1 }

</bundles_post_ra>
